<compile_context>
chip_gen: v7x
topology: tpu7x:2x2x1
jax: 0.10.0
libtpu: 0.0.40
codegen_flags: <defaults>
</compile_context>

<pallas_src>
import jax
import jax.numpy as jnp
from jax.experimental import pallas as pl
from jax.experimental.pallas import tpu as pltpu

_LANE = 128
_SUBLANE = 8


def _learned_pos_enc_kernel(x_ref, p_ref, o_ref):
    # x_ref: (bm, bn) lane-dense tile; p_ref: (1, bn) resident parameter tile.
    # Straight VPU add with a cheap sublane broadcast of p.
    o_ref[...] = x_ref[...] + p_ref[...]


def _packed_sublane(itemsize):
    # Rows per packed sublane tile: 8 for f32, 16 for bf16, 32 for int8/fp8.
    return _SUBLANE * max(1, 4 // int(itemsize))


def _choose_block(B, NF, itemsize):
    """Pick (bm, bn) such that one block is <= ~4 MiB, DMA is as contiguous as
    possible (prefer bn = NF), and the (8, 128) / full-extent rules hold."""
    budget = 4 * 1024 * 1024  # bytes per block
    sub = _packed_sublane(itemsize)
    row_bytes = NF * itemsize

    if min(B, sub) * row_bytes <= budget:
        # Full-row mode: each tile DMA is one contiguous bm * NF * itemsize run.
        bn = NF
        if B * row_bytes <= budget:
            bm = B                              # full extent along batch
        else:
            rows = budget // row_bytes
            bm = min(B, max(sub, (rows // sub) * sub))
    else:
        # Feature-tile mode: one packed-sublane group of rows; size the lane
        # axis against the *per-row-group* budget (fixes old bn/bm bug), any
        # multiple of 128 (no power-of-two divisor requirement).
        bm = min(B, sub)                        # B (full) or multiple of 8
        per_row_elems = (budget // bm) // itemsize
        bn = min(NF, max(_LANE, (per_row_elems // _LANE) * _LANE))
    return bm, bn


def learned_pos_enc(x, p):
    """x: [B, N, D], p: [N, D] -> x + p (broadcast over batch)."""
    B, N, D = x.shape
    assert p.shape == (N, D)
    NF = N * D

    # Match torch type promotion (e.g. bf16 x + f32 p -> f32).
    out_dtype = jnp.result_type(x.dtype, p.dtype)
    itemsize = jnp.dtype(out_dtype).itemsize

    # Lane-dense views, built in the wrapper (outside the kernel).
    x2 = x.reshape(B, NF).astype(out_dtype)
    p2 = p.reshape(1, NF).astype(out_dtype)

    bm, bn = _choose_block(B, NF, itemsize)
    grid = (pl.cdiv(NF, bn), pl.cdiv(B, bm))  # batch innermost -> p tile stays resident

    block_bytes = bm * bn * itemsize
    # Actual pipelined footprint: double-buffered x block + out block + p row.
    vmem_needed = 2 * block_bytes + 2 * block_bytes + 2 * bn * itemsize
    vmem_limit = int(min(max(int(1.25 * vmem_needed) + (1 << 20), 4 << 20),
                         48 << 20))  # never exceed ~48 MiB (v7x has 64 MiB/TC)

    out2 = pl.pallas_call(
        _learned_pos_enc_kernel,
        out_shape=jax.ShapeDtypeStruct((B, NF), out_dtype),
        grid_spec=pltpu.PrefetchScalarGridSpec(
            num_scalar_prefetch=0,
            grid=grid,
            in_specs=[
                pl.BlockSpec((bm, bn), lambda j, i: (i, j)),   # x tile
                pl.BlockSpec((1, bn), lambda j, i: (0, j)),    # p tile (resident over batch axis)
            ],
            out_specs=pl.BlockSpec((bm, bn), lambda j, i: (i, j)),
        ),
        compiler_params=pltpu.CompilerParams(
            dimension_semantics=("parallel", "parallel"),
            vmem_limit_bytes=vmem_limit,
        ),
        input_output_aliases={0: 0},  # x2 matches out dtype/shape -> donate its buffer
        cost_estimate=pl.CostEstimate(
            flops=B * NF,
            bytes_accessed=(2 * B * NF + NF) * itemsize,
            transcendentals=0,
        ),
    )(x2, p2)

    return out2.reshape(B, N, D)


def _check(B, N, D, dtype=jnp.float32, seed=0):
    key = jax.random.PRNGKey(seed)
    kx, kp = jax.random.split(key)
    # Mirrors nn.Parameter(torch.randn(n_seq, dim) * 0.02).
    p = (jax.random.normal(kp, (N, D), dtype=jnp.float32) * 0.02).astype(dtype)
    x = jax.random.normal(kx, (B, N, D), dtype=dtype)
    out = jax.block_until_ready(learned_pos_enc(x, p))
    ref = (x.astype(jnp.float32) + p.astype(jnp.float32)[None]).astype(out.dtype)
    assert out.shape == (B, N, D)
    assert jnp.allclose(out, ref, atol=1e-6), f"mismatch vs reference at {(B, N, D)}"


if __name__ == "__main__":
    # Module config: n_seq=8, dim=32; batch=2 (single grid step, full-row mode).
    _check(2, 8, 32)
    # A larger shape exercising batch tiling + a partial edge block
    # (NF = 3072 rows of 12 KiB; bm = 336 rows per ~4 MiB block, grid (1, 4)).
    _check(1024, 64, 48)
    print("KERNEL_OK")
</pallas_src>

<mosaic_0001>
module attributes {stable_mosaic.version = 11 : i64} {
  func.func @_learned_pos_enc_kernel(%arg0: i32, %arg1: i32, %arg2: memref<2x256xf32, #tpu.memory_space<vmem>>, %arg3: memref<1x256xf32, #tpu.memory_space<vmem>>, %arg4: memref<2x256xf32, #tpu.memory_space<vmem>>) attributes {dimension_semantics = [#tpu.dimension_semantics<parallel>, #tpu.dimension_semantics<parallel>], iteration_bounds = array<i64: 1, 1>, scalar_prefetch = 0 : i64, scratch_operands = 0 : i64, tpu.core_type = #tpu.core_type<tc>, window_params = [{transform_indices = @transform_0, window_bounds = array<i64: 2, 256>}, {transform_indices = @transform_1, window_bounds = array<i64: 1, 256>}, {transform_indices = @transform_2, window_bounds = array<i64: 2, 256>}]} {
    %c0 = arith.constant 0 : index
    %c0_0 = arith.constant 0 : index
    %0 = vector.load %arg2[%c0, %c0_0] : memref<2x256xf32, #tpu.memory_space<vmem>>, vector<2x256xf32>
    %c0_1 = arith.constant 0 : index
    %c0_2 = arith.constant 0 : index
    %1 = vector.load %arg3[%c0_1, %c0_2] : memref<1x256xf32, #tpu.memory_space<vmem>>, vector<1x256xf32>
    %2 = vector.broadcast %1 : vector<1x256xf32> to vector<2x256xf32>
    %3 = arith.addf %0, %2 : vector<2x256xf32>
    %c0_3 = arith.constant 0 : index
    %c0_4 = arith.constant 0 : index
    %4 = vector.load %arg4[%c0_3, %c0_4] : memref<2x256xf32, #tpu.memory_space<vmem>>, vector<2x256xf32>
    tpu.vector_store %arg4[%c0_3, %c0_4], %3 {strides = array<i32>} : memref<2x256xf32, #tpu.memory_space<vmem>>, vector<2x256xf32>,
    return
  }
  func.func @transform_0(%arg0: i32, %arg1: i32) -> (i32, i32) {
    %c0_i32 = arith.constant 0 : i32
    return %arg1, %arg0 : i32, i32
  }
  func.func @transform_1(%arg0: i32, %arg1: i32) -> (i32, i32) {
    %c0_i32 = arith.constant 0 : i32
    %c0_i32_0 = arith.constant 0 : i32
    return %c0_i32, %arg0 : i32, i32
  }
  func.func @transform_2(%arg0: i32, %arg1: i32) -> (i32, i32) {
    %c0_i32 = arith.constant 0 : i32
    return %arg1, %arg0 : i32, i32
  }
}

</mosaic_0001>

<bundles_post_ra>
// kernel: tpu_custom_call.1
= control target key start
LH: loop header
LB: loop body
LE: loop exit
PB: predicated region body
PF: predicated region fallthrough
CT: control target
= control target key end

     0   :  { %7 = vsyncpa [#allocation3], 0  ;;  %s157_s0 = inlined_call_operand.hbm [shape: f32[2,256], index: 0, kind: input, shape index: {}, may-alias: {0,2}]   ;;  %s158_s1 = inlined_call_operand.vmem [shape: f32[1,256], index: 1, kind: input, shape index: {}]   ;;  %s159_s2 = inlined_call_operand.hbm [shape: f32[2,256], index: 2, kind: output, shape index: {}, may-alias: {0,2}]  }
   0x1   :  { %8 = vsyncpa [#allocation4], 0  ;;  %s112_s9 = smov [#allocation2]   ;;  %s64_s13 = scalar_lea.hbm %s157_s0, 64 }
   0x2   :  { %s15_s10 = sshll.u32 %s112_s9, 4  ;;  %p65_p0 = scmp.ne.s32.totalorder %s157_s0, %s64_s13  ;;  %s16_s10 = int_to_ptr.vmem [resolvable:$true] %s15_s10 }
   0x3   :  { %p68_p1 = scmp.lt.u32.totalorder %s64_s13, %s157_s0 }
   0x5   :  { %p70_p2 = pnand %p68_p1, %p65_p0 }
   0x7   :  { %73 = shalt.err (!%p70_p2)
}
   0x8   :  { %s74_s18 = scalar_lea.vmem %s16_s10, 64  ;;  %p79_p4 = scmp.lt.s32.totalorder %s16_s10, %s16_s10 }
   0x9   :  { %p75_p3 = scmp.ne.s32.totalorder %s16_s10, %s74_s18  ;;  %p80_p5 = scmp.lt.s32.totalorder %s74_s18, %s74_s18 }
   0xb   :  { %p81_p6 = por %p80_p5, %p79_p4 }
   0xd   :  { %p82_p7 = pnand %p81_p6, %p75_p3 }
   0xf   :  { %85 = shalt.err (!%p82_p7)
}
  0x10   :  { %18 = dma.hbm_to_vmem [thread:$0]  %s157_s0, 64, %s16_s10, [#allocation3]  }
  0x11   :  { %108 = dma.done.wait [#allocation3], 64  }
  0x12   :  { %109 = vsyncadd [#allocation3], 4294967232  ;;  %v27_v0 = vlaneseq  ;;  %v113_v1 = vmov 1983009808   ;;  %v25_v7 = vld [vmem:[%s158_s1] sm:$0x3] }
  0x13   :  { %v37_v2 = vunpack.c.l.s4 %v113_v1  ;;  %v24_v12 = vld [vmem:[#allocation2] sm:$0xf]  ;;  %s114_s23 = smov [#allocation5]  }
  0x14   :  { %v28_v3 = vshrl.u32 %v27_v0, 7  ;;  %s52_s0 = sshll.u32 %s114_s23, 4  ;;  %s53_s0 = int_to_ptr.vmem [resolvable:$true] %s52_s0 }
  0x15   :  { %v38_v6 = vunpack.c.0.s8 %v37_v2  ;;  %s86_s24 = scalar_lea.vmem %s53_s0, 64  ;;  %p91_p9 = scmp.lt.s32.totalorder %s53_s0, %s53_s0 }
  0x16   :  { %v29_v4 = vsub.s32 0, %v28_v3  ;;  %v33_v5 = vsub.s32 1, %v28_v3  ;;  %p87_p8 = scmp.ne.s32.totalorder %s53_s0, %s86_s24  ;;  %p92_p10 = scmp.lt.s32.totalorder %s86_s24, %s86_s24 }
  0x17   :  { %v41_v10 = vsub.s32 %v38_v6, %v28_v3 }
  0x18   :  { %v30_v8 = vrot.slane %v25_v7, %v29_v4  ;;  %v34_v9 = vrot.slane %v25_v7, %v33_v5  ;;  %p93_p11 = por %p92_p10, %p91_p9 }
  0x1a   :  { %v35_v11 = vcombine.low %v30_v8, %v34_v9  ;;  %p94_p12 = pnand %p93_p11, %p87_p8 }
  0x1c   :  { %v42_v13 = vrot.slane %v35_v11, %v41_v10 }
  0x1e   :  { %v44_v14 = vadd.f32 %v42_v13, %v24_v12 }
  0x20   :  { %45 = vst [vmem:[#allocation5] sm:$0xf] %v44_v14 }
  0x21   :  { %97 = shalt.err (!%p94_p12)
}
  0x22   :  { %s98_s26 = scalar_lea.hbm %s159_s2, 64 }
  0x23   :  { %p99_p13 = scmp.ne.s32.totalorder %s159_s2, %s98_s26  ;;  %p102_p0 = scmp.lt.u32.totalorder %s98_s26, %s159_s2 }
  0x25   :  { %p104_p1 = pnand %p102_p0, %p99_p13 }
  0x27   :  { %107 = shalt.err (!%p104_p1)
}
  0x28   :  { %55 = dma.vmem_to_hbm [thread:$0]  %s53_s0, 64, %s159_s2, [#allocation4]  }
  0x29   :  { %110 = dma.done.wait [#allocation4], 64  }
  0x2a   :  { %111 = vsyncadd [#allocation4], 4294967232 }
  0x2b   :  { %59 = vsyncpa [#allocation3], 1 }
  0x2c   :  { %60 = vsyncpa [#allocation4], 1 }

</bundles_post_ra>
